<compile_context>
chip_gen: v7x
topology: tpu7x:2x2x1
jax: 0.10.0
libtpu: 0.0.40
codegen_flags: <defaults>
</compile_context>

<pallas_src>
import functools

import jax
import jax.numpy as jnp
from jax import lax
from jax.experimental import pallas as pl
from jax.experimental.pallas import tpu as pltpu


def _round_up(x, m):
    return ((x + m - 1) // m) * m


def _micro_brain_kernel(x_ref, w1_ref, b1_ref, w2_ref, b2_ref, w3_ref, b3_ref,
                        e_ref, mx_ref, sm_ref, *, batch, tb):
    # Lane-major compute: batch lives on the (fast) lane axis.
    xt = x_ref[...]                                                  # (4, TB)

    # Linear(4, 32) + ReLU :  (32,4) @ (4,TB) -> (32,TB)
    h1 = jnp.dot(w1_ref[...], xt, preferred_element_type=jnp.float32)
    h1 = jnp.maximum(h1 + b1_ref[...], 0.0)

    # Linear(32, 32) + ReLU
    h2 = jnp.dot(w2_ref[...], h1, preferred_element_type=jnp.float32)
    h2 = jnp.maximum(h2 + b2_ref[...], 0.0)

    # Linear(32, 3)
    logits = jnp.dot(w3_ref[...], h2, preferred_element_type=jnp.float32)
    logits = logits + b3_ref[...]                                    # (3, TB)

    # Mask batch-padding lanes so they never enter the dim-0 softmax statistics.
    lane = lax.broadcasted_iota(jnp.int32, logits.shape, 1)
    gidx = pl.program_id(0) * tb + lane
    valid = gidx < batch

    very_neg = jnp.float32(-3.0e38)
    tile_max = jnp.max(jnp.where(valid, logits, very_neg),
                       axis=1, keepdims=True)                        # (3, 1)
    e = jnp.where(valid, jnp.exp(logits - tile_max), 0.0)            # (3, TB)
    tile_sum = jnp.sum(e, axis=1, keepdims=True)                     # (3, 1)

    e_ref[...] = e            # lane-dense (3, TB) store
    mx_ref[0] = tile_max
    sm_ref[0] = tile_sum


def micro_brain(x, params, *, block_batch=512):
    """params = ((w1,b1),(w2,b2),(w3,b3)) in PyTorch layout: w=(out,in), b=(out,)."""
    (w1, b1), (w2, b2), (w3, b3) = params
    B, F = x.shape
    assert F == 4

    # Batch tile: multiple of 128 lanes, large enough to amortize per-step overhead.
    TB = min(block_batch, _round_up(B, 128))
    nt = pl.cdiv(B, TB)
    B_pad = nt * TB

    # Lane-dense layout: batch on the last (lane) axis, zero-padded.
    xt = jnp.zeros((4, B_pad), jnp.float32).at[:, :B].set(x.T.astype(jnp.float32))

    w1c = w1.astype(jnp.float32)                 # (32, 4)
    w2c = w2.astype(jnp.float32)                 # (32, 32)
    w3c = w3.astype(jnp.float32)                 # (3, 32)
    b1c = b1.reshape(32, 1).astype(jnp.float32)
    b2c = b2.reshape(32, 1).astype(jnp.float32)
    b3c = b3.reshape(3, 1).astype(jnp.float32)

    flops = 2 * B_pad * (4 * 32 + 32 * 32 + 32 * 3)
    bytes_accessed = 4 * (4 * B_pad + 3 * B_pad + 6 * nt
                          + w1c.size + w2c.size + w3c.size + 32 + 32 + 3)

    kernel = functools.partial(_micro_brain_kernel, batch=B, tb=TB)

    e_pad, mx, sm = pl.pallas_call(
        kernel,
        grid=(nt,),
        in_specs=[
            pl.BlockSpec((4, TB), lambda i: (0, i)),      # x tile (streamed)
            pl.BlockSpec((32, 4), lambda i: (0, 0)),      # weights: constant block
            pl.BlockSpec((32, 1), lambda i: (0, 0)),      #   index -> stay resident
            pl.BlockSpec((32, 32), lambda i: (0, 0)),
            pl.BlockSpec((32, 1), lambda i: (0, 0)),
            pl.BlockSpec((3, 32), lambda i: (0, 0)),
            pl.BlockSpec((3, 1), lambda i: (0, 0)),
        ],
        out_specs=[
            pl.BlockSpec((3, TB), lambda i: (0, i)),      # exp(logits - tile_max)
            pl.BlockSpec((1, 3, 1), lambda i: (i, 0, 0)),  # per-tile max
            pl.BlockSpec((1, 3, 1), lambda i: (i, 0, 0)),  # per-tile sum
        ],
        out_shape=[
            jax.ShapeDtypeStruct((3, B_pad), jnp.float32),
            jax.ShapeDtypeStruct((nt, 3, 1), jnp.float32),
            jax.ShapeDtypeStruct((nt, 3, 1), jnp.float32),
        ],
        compiler_params=pltpu.CompilerParams(dimension_semantics=("parallel",)),
        cost_estimate=pl.CostEstimate(flops=flops,
                                      transcendentals=3 * B_pad,
                                      bytes_accessed=bytes_accessed),
    )(xt, w1c, b1c, w2c, b2c, w3c, b3c)

    # Exact cross-tile combine of the dim-0 (batch) softmax: tiny (nt, 3) reduction
    # done in plain JAX so the grid axis stays truly parallel.
    gmax = jnp.max(mx, axis=0)                    # (3, 1)
    corr = jnp.exp(mx - gmax)                     # (nt, 3, 1)
    gsum = jnp.sum(sm * corr, axis=0)             # (3, 1)
    scale = corr / gsum                           # (nt, 3, 1)

    e_tiles = e_pad.reshape(3, nt, TB)
    out_t = e_tiles * jnp.transpose(scale, (1, 0, 2))   # (3, nt, TB)
    return out_t.reshape(3, B_pad)[:, :B].T             # (B, 3)


def micro_brain_ref(x, params):
    """Pure-JAX reference matching the PyTorch module."""
    (w1, b1), (w2, b2), (w3, b3) = params
    h1 = jnp.maximum(x @ w1.T + b1, 0.0)
    h2 = jnp.maximum(h1 @ w2.T + b2, 0.0)
    logits = h2 @ w3.T + b3
    return jax.nn.softmax(logits, axis=0)        # Softmax over dim 0 (batch)


def init_params(key):
    """PyTorch-style init; weights in nn.Linear layout (out_features, in_features)."""
    k1, k2, k3, k4, k5, k6 = jax.random.split(key, 6)

    def linear(kw, kb, fan_in, fan_out):
        bound = 1.0 / float(fan_in) ** 0.5
        w = jax.random.uniform(kw, (fan_out, fan_in), jnp.float32, -bound, bound)
        b = jax.random.uniform(kb, (fan_out,), jnp.float32, -bound, bound)
        return w, b

    return (linear(k1, k2, 4, 32), linear(k3, k4, 32, 32), linear(k5, k6, 32, 3))


if __name__ == "__main__":
    key = jax.random.PRNGKey(0)
    k_param, k_x = jax.random.split(key)

    params = init_params(k_param)
    x = jax.random.normal(k_x, (8, 4), dtype=jnp.float32)   # batch=8, features=4

    fwd = jax.jit(micro_brain)
    out = jax.block_until_ready(fwd(x, params))
    ref = jax.block_until_ready(micro_brain_ref(x, params))

    assert out.shape == (8, 3)
    # Softmax over dim=0 -> each of the 3 columns sums to 1.
    assert jnp.allclose(jnp.sum(out, axis=0), jnp.ones(3), atol=1e-5)
    # Match the pure-JAX reference (tolerance covers MXU bf16-pass rounding).
    assert jnp.max(jnp.abs(out - ref)) < 5e-3

    print("KERNEL_OK")
</pallas_src>

<mosaic_0001>
module attributes {stable_mosaic.version = 11 : i64} {
  func.func @_micro_brain_kernel(%arg0: i32, %arg1: memref<4x128xf32, #tpu.memory_space<vmem>>, %arg2: memref<32x4xf32, #tpu.memory_space<vmem>>, %arg3: memref<32x1xf32, #tpu.memory_space<vmem>>, %arg4: memref<32x32xf32, #tpu.memory_space<vmem>>, %arg5: memref<32x1xf32, #tpu.memory_space<vmem>>, %arg6: memref<3x32xf32, #tpu.memory_space<vmem>>, %arg7: memref<3x1xf32, #tpu.memory_space<vmem>>, %arg8: memref<3x128xf32, #tpu.memory_space<vmem>>, %arg9: memref<1x3x1xf32, #tpu.memory_space<vmem>>, %arg10: memref<1x3x1xf32, #tpu.memory_space<vmem>>) attributes {dimension_semantics = [#tpu.dimension_semantics<parallel>], iteration_bounds = array<i64: 1>, scalar_prefetch = 0 : i64, scratch_operands = 0 : i64, tpu.core_type = #tpu.core_type<tc>, window_params = [{transform_indices = @transform_0, window_bounds = array<i64: 4, 128>}, {pipeline_mode = #tpu.pipeline_mode<synchronous>, transform_indices = @transform_1, window_bounds = array<i64: 32, 4>}, {pipeline_mode = #tpu.pipeline_mode<synchronous>, transform_indices = @transform_2, window_bounds = array<i64: 32, 1>}, {pipeline_mode = #tpu.pipeline_mode<synchronous>, transform_indices = @transform_3, window_bounds = array<i64: 32, 32>}, {pipeline_mode = #tpu.pipeline_mode<synchronous>, transform_indices = @transform_4, window_bounds = array<i64: 32, 1>}, {pipeline_mode = #tpu.pipeline_mode<synchronous>, transform_indices = @transform_5, window_bounds = array<i64: 3, 32>}, {pipeline_mode = #tpu.pipeline_mode<synchronous>, transform_indices = @transform_6, window_bounds = array<i64: 3, 1>}, {transform_indices = @transform_7, window_bounds = array<i64: 3, 128>}, {transform_indices = @transform_8, window_bounds = array<i64: 1, 3, 1>}, {transform_indices = @transform_9, window_bounds = array<i64: 1, 3, 1>}]} {
    %c0 = arith.constant 0 : index
    %c0_0 = arith.constant 0 : index
    %0 = vector.load %arg1[%c0, %c0_0] : memref<4x128xf32, #tpu.memory_space<vmem>>, vector<4x128xf32>
    %c0_1 = arith.constant 0 : index
    %c0_2 = arith.constant 0 : index
    %1 = vector.load %arg2[%c0_1, %c0_2] : memref<32x4xf32, #tpu.memory_space<vmem>>, vector<32x4xf32>
    %cst = arith.constant dense<0.000000e+00> : vector<32x128xf32>
    %2 = tpu.matmul %1, %0, %cst {dimension_numbers = #tpu.dot_dimension_numbers<[1], [0], [0], [1], [0, 0, 1, 1], [], []>} : vector<32x4xf32>, vector<4x128xf32>, vector<32x128xf32> -> vector<32x128xf32>
    %c0_3 = arith.constant 0 : index
    %c0_4 = arith.constant 0 : index
    %3 = vector.load %arg3[%c0_3, %c0_4] : memref<32x1xf32, #tpu.memory_space<vmem>>, vector<32x1xf32>
    %4 = vector.broadcast %3 : vector<32x1xf32> to vector<32x128xf32>
    %5 = arith.addf %2, %4 : vector<32x128xf32>
    %cst_5 = arith.constant 0.000000e+00 : f32
    %6 = vector.broadcast %cst_5 : f32 to vector<32x128xf32>
    %7 = arith.maximumf %5, %6 : vector<32x128xf32>
    %c0_6 = arith.constant 0 : index
    %c0_7 = arith.constant 0 : index
    %8 = vector.load %arg4[%c0_6, %c0_7] : memref<32x32xf32, #tpu.memory_space<vmem>>, vector<32x32xf32>
    %cst_8 = arith.constant dense<0.000000e+00> : vector<32x128xf32>
    %9 = tpu.matmul %8, %7, %cst_8 {dimension_numbers = #tpu.dot_dimension_numbers<[1], [0], [0], [1], [0, 0, 1, 1], [], []>} : vector<32x32xf32>, vector<32x128xf32>, vector<32x128xf32> -> vector<32x128xf32>
    %c0_9 = arith.constant 0 : index
    %c0_10 = arith.constant 0 : index
    %10 = vector.load %arg5[%c0_9, %c0_10] : memref<32x1xf32, #tpu.memory_space<vmem>>, vector<32x1xf32>
    %11 = vector.broadcast %10 : vector<32x1xf32> to vector<32x128xf32>
    %12 = arith.addf %9, %11 : vector<32x128xf32>
    %cst_11 = arith.constant 0.000000e+00 : f32
    %13 = vector.broadcast %cst_11 : f32 to vector<32x128xf32>
    %14 = arith.maximumf %12, %13 : vector<32x128xf32>
    %c0_12 = arith.constant 0 : index
    %c0_13 = arith.constant 0 : index
    %15 = vector.load %arg6[%c0_12, %c0_13] : memref<3x32xf32, #tpu.memory_space<vmem>>, vector<3x32xf32>
    %cst_14 = arith.constant dense<0.000000e+00> : vector<3x128xf32>
    %16 = tpu.matmul %15, %14, %cst_14 {dimension_numbers = #tpu.dot_dimension_numbers<[1], [0], [0], [1], [0, 0, 1, 1], [], []>} : vector<3x32xf32>, vector<32x128xf32>, vector<3x128xf32> -> vector<3x128xf32>
    %c0_15 = arith.constant 0 : index
    %c0_16 = arith.constant 0 : index
    %17 = vector.load %arg7[%c0_15, %c0_16] : memref<3x1xf32, #tpu.memory_space<vmem>>, vector<3x1xf32>
    %18 = vector.broadcast %17 : vector<3x1xf32> to vector<3x128xf32>
    %19 = arith.addf %16, %18 : vector<3x128xf32>
    %20 = tpu.iota {dimensions = array<i32: 1>} : vector<3x128xi32>
    %c128_i32 = arith.constant 128 : i32
    %21 = arith.muli %arg0, %c128_i32 : i32
    %22 = vector.broadcast %21 : i32 to vector<3x128xi32>
    %23 = arith.addi %22, %20 : vector<3x128xi32>
    %c8_i32 = arith.constant 8 : i32
    %24 = vector.broadcast %c8_i32 : i32 to vector<3x128xi32>
    %25 = arith.cmpi slt, %23, %24 : vector<3x128xi32>
    %cst_17 = arith.constant -3.000000e+38 : f32
    %26 = vector.broadcast %cst_17 : f32 to vector<3x128xf32>
    %27 = arith.select %25, %19, %26 : vector<3x128xi1>, vector<3x128xf32>
    %cst_18 = arith.constant dense<0xFF800000> : vector<3xf32>
    %28 = vector.multi_reduction <maximumf>, %27, %cst_18 [1] : vector<3x128xf32> to vector<3xf32>
    %29 = vector.shape_cast %28 : vector<3xf32> to vector<3x1xf32>
    %30 = vector.broadcast %29 : vector<3x1xf32> to vector<3x128xf32>
    %31 = arith.subf %19, %30 : vector<3x128xf32>
    %32 = math.exp %31 : vector<3x128xf32>
    %cst_19 = arith.constant 0.000000e+00 : f32
    %33 = vector.broadcast %cst_19 : f32 to vector<3x128xf32>
    %34 = arith.select %25, %32, %33 : vector<3x128xi1>, vector<3x128xf32>
    %cst_20 = arith.constant dense<0.000000e+00> : vector<3xf32>
    %35 = vector.multi_reduction <add>, %34, %cst_20 [1] : vector<3x128xf32> to vector<3xf32>
    %36 = vector.shape_cast %35 : vector<3xf32> to vector<3x1xf32>
    %c0_21 = arith.constant 0 : index
    %c0_22 = arith.constant 0 : index
    %37 = vector.load %arg8[%c0_21, %c0_22] : memref<3x128xf32, #tpu.memory_space<vmem>>, vector<3x128xf32>
    tpu.vector_store %arg8[%c0_21, %c0_22], %34 {strides = array<i32>} : memref<3x128xf32, #tpu.memory_space<vmem>>, vector<3x128xf32>,
    %c0_23 = arith.constant 0 : index
    %c0_24 = arith.constant 0 : index
    %c0_25 = arith.constant 0 : index
    %38 = vector.load %arg9[%c0_23, %c0_24, %c0_25] : memref<1x3x1xf32, #tpu.memory_space<vmem>>, vector<1x3x1xf32>
    %39 = vector.shape_cast %38 : vector<1x3x1xf32> to vector<3x1xf32>
    %40 = vector.shape_cast %29 : vector<3x1xf32> to vector<1x3x1xf32>
    tpu.vector_store %arg9[%c0_23, %c0_24, %c0_25], %40 {strides = array<i32>} : memref<1x3x1xf32, #tpu.memory_space<vmem>>, vector<1x3x1xf32>,
    %c0_26 = arith.constant 0 : index
    %c0_27 = arith.constant 0 : index
    %c0_28 = arith.constant 0 : index
    %41 = vector.load %arg10[%c0_26, %c0_27, %c0_28] : memref<1x3x1xf32, #tpu.memory_space<vmem>>, vector<1x3x1xf32>
    %42 = vector.shape_cast %41 : vector<1x3x1xf32> to vector<3x1xf32>
    %43 = vector.shape_cast %36 : vector<3x1xf32> to vector<1x3x1xf32>
    tpu.vector_store %arg10[%c0_26, %c0_27, %c0_28], %43 {strides = array<i32>} : memref<1x3x1xf32, #tpu.memory_space<vmem>>, vector<1x3x1xf32>,
    return
  }
  func.func @transform_0(%arg0: i32) -> (i32, i32) {
    %c0_i32 = arith.constant 0 : i32
    %c0_i32_0 = arith.constant 0 : i32
    return %c0_i32, %arg0 : i32, i32
  }
  func.func @transform_1(%arg0: i32) -> (i32, i32) {
    %c0_i32 = arith.constant 0 : i32
    %c0_i32_0 = arith.constant 0 : i32
    %c0_i32_1 = arith.constant 0 : i32
    return %c0_i32, %c0_i32_0 : i32, i32
  }
  func.func @transform_2(%arg0: i32) -> (i32, i32) {
    %c0_i32 = arith.constant 0 : i32
    %c0_i32_0 = arith.constant 0 : i32
    %c0_i32_1 = arith.constant 0 : i32
    return %c0_i32, %c0_i32_0 : i32, i32
  }
  func.func @transform_3(%arg0: i32) -> (i32, i32) {
    %c0_i32 = arith.constant 0 : i32
    %c0_i32_0 = arith.constant 0 : i32
    %c0_i32_1 = arith.constant 0 : i32
    return %c0_i32, %c0_i32_0 : i32, i32
  }
  func.func @transform_4(%arg0: i32) -> (i32, i32) {
    %c0_i32 = arith.constant 0 : i32
    %c0_i32_0 = arith.constant 0 : i32
    %c0_i32_1 = arith.constant 0 : i32
    return %c0_i32, %c0_i32_0 : i32, i32
  }
  func.func @transform_5(%arg0: i32) -> (i32, i32) {
    %c0_i32 = arith.constant 0 : i32
    %c0_i32_0 = arith.constant 0 : i32
    %c0_i32_1 = arith.constant 0 : i32
    return %c0_i32, %c0_i32_0 : i32, i32
  }
  func.func @transform_6(%arg0: i32) -> (i32, i32) {
    %c0_i32 = arith.constant 0 : i32
    %c0_i32_0 = arith.constant 0 : i32
    %c0_i32_1 = arith.constant 0 : i32
    return %c0_i32, %c0_i32_0 : i32, i32
  }
  func.func @transform_7(%arg0: i32) -> (i32, i32) {
    %c0_i32 = arith.constant 0 : i32
    %c0_i32_0 = arith.constant 0 : i32
    return %c0_i32, %arg0 : i32, i32
  }
  func.func @transform_8(%arg0: i32) -> (i32, i32, i32) {
    %c0_i32 = arith.constant 0 : i32
    %c0_i32_0 = arith.constant 0 : i32
    %c0_i32_1 = arith.constant 0 : i32
    return %arg0, %c0_i32, %c0_i32_0 : i32, i32, i32
  }
  func.func @transform_9(%arg0: i32) -> (i32, i32, i32) {
    %c0_i32 = arith.constant 0 : i32
    %c0_i32_0 = arith.constant 0 : i32
    %c0_i32_1 = arith.constant 0 : i32
    return %arg0, %c0_i32, %c0_i32_0 : i32, i32, i32
  }
}

</mosaic_0001>

<bundles_post_ra>
// kernel: micro_brain.1
= control target key start
LH: loop header
LB: loop body
LE: loop exit
PB: predicated region body
PF: predicated region fallthrough
CT: control target
= control target key end

     0   :  { %vm71_vm0 = vcmask 1043456   ;;  %vm58_vm1 = vcmask 31744   ;;  %v491_v3 = vmov 0   ;;  %vm192_vm2 = vcmask 261120   ;;  %s622_s0 = inlined_call_operand.vmem [shape: f32[4,128], index: 0, kind: input, shape index: {}]   ;;  %s623_s1 = inlined_call_operand.vmem [shape: f32[32,4], index: 1, kind: input, shape index: {}]   ;;  %s624_s2 = inlined_call_operand.vmem [shape: f32[32,1], index: 2, kind: input, shape index: {}]   ;;  %s625_s4 = inlined_call_operand.vmem [shape: f32[32,1], index: 4, kind: input, shape index: {}]   ;;  %s626_s6 = inlined_call_operand.vmem [shape: f32[3,1], index: 6, kind: input, shape index: {}]   ;;  %s627_s3 = inlined_call_operand.vmem [shape: f32[32,32], index: 3, kind: input, shape index: {}]   ;;  %s628_s5 = inlined_call_operand.vmem [shape: f32[3,32], index: 5, kind: input, shape index: {}]   ;;  %s629_s8 = inlined_call_operand.vmem [shape: f32[1,3,1], index: 8, kind: output, shape index: {1}]   ;;  %s630_s7 = inlined_call_operand.vmem [shape: f32[3,128], index: 7, kind: output, shape index: {0}]   ;;  %s631_s9 = inlined_call_operand.vmem [shape: f32[1,3,1], index: 9, kind: output, shape index: {2}]  }
   0x1   :  { %v29_v0 = vld [vmem:[%s622_s0] sm:$0xf]  ;;  %v31_v2 = vld [vmem:[%s623_s1 + $0x8] sm:$0xff]  ;;  %487 = vset.pattern.permute.xlu0 %v491_v3  ;;  %488 = vset.pattern.permute.xlu1 %v491_v3  ;;  %v32_v4 = vld [vmem:[%s623_s1 + $0x10] sm:$0xff]  ;;  %v492_v37 = vmov 0.0|0.0   ;;  %vm493_vm3 = vmmov 0   ;;  %v374_v58 = vlaneseq }
   0x2   :  { %v30_v1 = vld [vmem:[%s623_s1] sm:$0xff]  ;;  %436 = vmatprep.subr.msk.mxu0 %vm71_vm0, %v29_v0  ;;  %v36_v6 = vld [vmem:[%s624_s2 + $0x10] sm:$0xff]  ;;  %v35_v7 = vld [vmem:[%s624_s2 + $0x8] sm:$0xff]  ;;  %v494_v38 = vmov 0.0   ;;  %vm381_vm5 = vcmask 1042432   ;;  %vm393_vm6 = vcmask 2048  }
   0x3   :  { %438 = vmatprep.mubr.msk.f32.mxu0 %vm58_vm1, %v30_v1  ;;  %v34_v5 = vld [vmem:[%s624_s2] sm:$0xff]  ;;  %437 = vmatpush3.msk.msra.mxu0 %vm71_vm0, %v29_v0  ;;  %v33_v8 = vld [vmem:[%s623_s1 + $0x18] sm:$0xff]  ;;  %v169_v11 = vld [vmem:[%s625_s4 + $0x8] sm:$0xff]  ;;  %v375_v59 = vand.u32 127, %v374_v58 }
   0x4   :  { %40 = vperm.xlu0 %487, %v34_v5   ;;  %439 = vmatmul.mubr.msk.f32.vlgmr.msra.gmra.mrb[0].mxu0 %vm58_vm1, %v31_v2  ;;  %v37_v9 = vld [vmem:[%s624_s2 + $0x18] sm:$0xff]  ;;  %v168_v10 = vld [vmem:[%s625_s4] sm:$0xff]  ;;  %v170_v12 = vld [vmem:[%s625_s4 + $0x10] sm:$0xff] }
   0x5   :  { %50 = vperm.xlu1 %488, %v36_v6   ;;  %441 = vmatprep.mubr.msk.f32.mxu0 %vm58_vm1, %v32_v4  ;;  %v171_v13 = vld [vmem:[%s625_s4 + $0x18] sm:$0xff]  ;;  %v295_v14 = vld [vmem:[%s626_s6] sm:$0x7]  ;;  %v165_v34 = vld [vmem:[%s627_s3 + $0x8] sm:$0xff]  ;;  %vm379_vm4 = vcmp.lt.s32.totalorder %v375_v59, 8 }
   0x6   :  { %v164_v15 = vld [vmem:[%s627_s3] sm:$0xff]  ;;  %v166_v35 = vld [vmem:[%s627_s3 + $0x10] sm:$0xff]  ;;  %v167_v36 = vld [vmem:[%s627_s3 + $0x18] sm:$0xff]  ;;  %477 = vmatprep.subr.bf16.mxu0 %v492_v37 }
   0x7   :  { %452 = vmatprep.mubr.msk.f32.mxu1 %vm192_vm2, %v164_v15  ;;  %v294_v57 = vld [vmem:[%s628_s5] sm:$0x7] }
   0x8   :  { %45 = vperm.xlu0 %487, %v35_v7   ;;  %442 = vmatmul.mubr.msk.f32.gmra.mrb[2].mxu0 %vm58_vm1, %v33_v8 }
   0x9   :  { %55 = vperm.xlu1 %488, %v37_v9   ;;  %466 = vmatprep.mubr.msk.f32.mxu0 %vm493_vm3, %v494_v38 }
   0xc   :  { %174 = vperm.xlu0 %487, %v168_v10  }
   0xd   :  { %179 = vperm.xlu1 %488, %v169_v11  }
  0x10   :  { %184 = vperm.xlu0 %487, %v170_v12  }
  0x11   :  { %189 = vperm.xlu1 %488, %v171_v13  }
  0x14   :  { %298 = vperm.xlu0 %487, %v295_v14  }
  0x83   :  { %v41_v16 = vpop.permute.xlu0 %40 }
  0x84   :  { %v51_v17 = vpop.permute.xlu1 %50 }
  0x87   :  { %v46_v18 = vpop.permute.xlu0 %45 }
  0x88   :  { %v56_v24 = vpop.permute.xlu1 %55 }
  0x8b   :  { %v175_v40 = vpop.permute.xlu0 %174 }
  0x8c   :  { %v180_v39 = vpop.permute.xlu1 %179 }
  0x8f   :  { %v185_v49 = vpop.permute.xlu0 %184 }
  0x90   :  { %v190_v46 = vpop.permute.xlu1 %189 }
  0x93   :  { %v299_v60 = vpop.permute.xlu0 %298 }
  0xd7   :  { %v440_v19 = vpop.f32.mrb[0].mxu0 }
  0xd8   :  { %v147_v20 = vadd.f32 %v440_v19, %v46_v18  ;;  %v141_v21 = vpop.f32.mrb[1].mxu0 }
  0xd9   :  { %v142_v22 = vadd.f32 %v141_v21, %v41_v16 }
  0xda   :  { %v161_v23 = vmax.f32 %v147_v20, 0.0 }
  0xdb   :  { %v160_v25 = vmax.f32 %v142_v22, 0.0  ;;  %v443_v26 = vpop.f32.mrb[2].mxu0 }
  0xdc   :  { %v157_v27 = vadd.f32 %v443_v26, %v56_v24  ;;  %v151_v28 = vpop.f32.mrb[3].mxu0 }
  0xdd   :  { %v152_v29 = vadd.f32 %v151_v28, %v51_v17  ;;  %v469_v30 = vpack.c.bf16 %v161_v23, %v160_v25 }
  0xde   :  { %v163_v31 = vmax.f32 %v157_v27, 0.0 }
  0xdf   :  { %v162_v32 = vmax.f32 %v152_v29, 0.0  ;;  %470 = vmatprep.subr.bf16.mxu1 %v469_v30 }
  0xe0   :  { %472 = vmatpush3.bf16.msra.mxu1 %v469_v30 }
  0xe1   :  { %v473_v33 = vpack.c.bf16 %v163_v31, %v162_v32 }
  0xe3   :  { %474 = vmatprep.subr.bf16.mxu1 %v473_v33 }
  0xe4   :  { %476 = vmatpush3.bf16.msra.mxu1 %v473_v33 }
  0xe7   :  { %453 = vmatmul.mubr.msk.f32.vlgmr.msra.gmra.mrb[0].mxu1 %vm192_vm2, %v165_v34 }
  0xe8   :  { %455 = vmatprep.mubr.msk.f32.mxu1 %vm192_vm2, %v166_v35 }
  0xeb   :  { %456 = vmatmul.mubr.msk.f32.gmra.mrb[2].mxu1 %vm192_vm2, %v167_v36 }
 0x1ba   :  { %v454_v41 = vpop.f32.mrb[0].mxu1 }
 0x1bb   :  { %v277_v42 = vadd.f32 %v454_v41, %v180_v39  ;;  %v271_v43 = vpop.f32.mrb[1].mxu1 }
 0x1bc   :  { %v272_v44 = vadd.f32 %v271_v43, %v175_v40 }
 0x1bd   :  { %v291_v45 = vmax.f32 %v277_v42, 0.0 }
 0x1be   :  { %v290_v47 = vmax.f32 %v272_v44, 0.0  ;;  %v457_v48 = vpop.f32.mrb[2].mxu1 }
 0x1bf   :  { %v287_v50 = vadd.f32 %v457_v48, %v190_v46  ;;  %v281_v51 = vpop.f32.mrb[3].mxu1 }
 0x1c0   :  { %v478_v52 = vpack.c.bf16 %v291_v45, %v290_v47  ;;  %v282_v53 = vadd.f32 %v281_v51, %v185_v49 }
 0x1c1   :  { %v293_v54 = vmax.f32 %v287_v50, 0.0 }
 0x1c2   :  { %v292_v55 = vmax.f32 %v282_v53, 0.0  ;;  %479 = vmatpush3.bf16.msra.mxu0 %v478_v52 }
 0x1c3   :  { %480 = vmatprep.subr.bf16.mxu0 %v492_v37 }
 0x1c4   :  { %v481_v56 = vpack.c.bf16 %v293_v54, %v292_v55 }
 0x1c6   :  { %482 = vmatpush3.bf16.msra.mxu0 %v481_v56 }
 0x1c9   :  { %467 = vmatmul.mubr.msk.f32.vlgmr.msra.gmra.mrb[4].mxu0 %vm192_vm2, %v294_v57 }
 0x29c   :  { %v370_v61 = vpop.f32.mrb[4].mxu0 }
 0x29d   :  { %v371_v62 = vadd.f32 %v370_v61, %v299_v60  ;;  %v468_v63 = vpop.f32.mrb[5].mxu0 }
 0x29f   :  { %v380_v0 = vsel %vm379_vm4, %v371_v62, -3e+38 }
 0x2a0   :  { %v382_v1 = vsel %vm381_vm5, %v380_v0, -inf }
 0x2a1   :  { %383 = vmax.xlane.f32.xlu1 %v382_v1 }
 0x32e   :  { %v384_v2 = vpop.xlane.xlu1 %383 }
 0x32f   :  { %v385_v3 = vsub.f32 %v371_v62, %v384_v2  ;;  %394 = vst.msk [vmem:[%s629_s8] sm:$0x7] %vm393_vm6, %v384_v2 }
 0x331   :  { %v386_v4 = vmul.f32 1.442695, %v385_v3 }
 0x333   :  { %489 = vpow2.f32 %v386_v4 }
 0x33d   :  { %v490_v5 = vpop.eup %489 }
 0x33e   :  { %v388_v6 = vsel %vm379_vm4, %v490_v5, 0.0 }
 0x33f   :  { %v389_v7 = vsel %vm381_vm5, %v388_v6, 0.0  ;;  %392 = vst [vmem:[%s630_s7] sm:$0x7] %v388_v6 }
 0x340   :  { %390 = vadd.xlane.f32.xlu0 %v389_v7 }
 0x3cd   :  { %v391_v8 = vpop.xlane.xlu0 %390 }
 0x3ce   :  { %395 = vst.msk [vmem:[%s631_s9] sm:$0x7] %vm393_vm6, %v391_v8 }

</bundles_post_ra>
